<compile_context>
chip_gen: v7x
topology: tpu7x:2x2x1
jax: 0.10.0
libtpu: 0.0.40
codegen_flags: <defaults>
</compile_context>

<pallas_src>
import functools

import jax
import jax.numpy as jnp
from jax import lax
from jax.experimental import pallas as pl
from jax.experimental.pallas import tpu as pltpu
import numpy as np


EPS = 1e-5


def _hm_kernel(x_ref, w1_ref, b1_ref, w2_ref, b2_ref, out_ref, pad_ref, *, H, W):
    # x_ref:   (1, Cin, H*W)     input, spatial flattened onto the lane axis
    # w1_ref:  (Cmid, 9*Cin)     tap-major columns: (ky*3 + kx)*Cin + cin
    # b1_ref:  (Cmid, 1)
    # w2_ref:  (Cmid, Cmid)      (out, in)
    # b2_ref:  (Cmid, 1)
    # out_ref: (1, Cmid, H*W)    lane-dense output
    # pad_ref: (Cin, (H+6)*W)    VMEM scratch: zero-padded (3 rows top/bottom) copy
    HW = H * W
    inv_hw = 1.0 / float(HW)

    x = x_ref[0]                                    # (Cin, HW)
    cin = x.shape[0]

    # In-kernel zero padding (replaces the wrapper-side jnp.pad HBM pass).
    # Zero every iteration so correctness does not depend on which TensorCore
    # gets which grid step under megacore sharding.
    pad_ref[...] = jnp.zeros_like(pad_ref)
    pad_ref[:, 3 * W:3 * W + HW] = x
    xp = pad_ref[...]                               # (Cin, (H+6)*W)

    # Lane masks for the +/-2 column taps ('same' zero padding along W).
    # Hoisted once; iota built at full tap shape so no broadcast inside the loop.
    col = lax.broadcasted_iota(jnp.int32, (cin, HW), 1) % W
    mask_l = col >= 2            # column (w - 2) is in range
    mask_r = col < (W - 2)       # column (w + 2) is in range

    # im2col from contiguous lane slices (no (H,W)->H*W reshape inside the kernel).
    taps = []
    for ky in range(3):
        for kx in range(3):
            off = (3 + (ky - 1) * 2) * W + (kx - 1) * 2
            t = xp[:, off:off + HW]                 # (Cin, HW)
            if kx == 0:
                t = jnp.where(mask_l, t, 0.0)
            elif kx == 2:
                t = jnp.where(mask_r, t, 0.0)
            taps.append(t)
    cols = jnp.concatenate(taps, axis=0)            # (9*Cin, HW)

    # conv1 (dilated 3x3, padding='same') as a single MXU matmul + bias.
    acc = jnp.dot(w1_ref[...], cols, preferred_element_type=jnp.float32)
    acc = acc + b1_ref[...]                         # (Cmid, HW)

    # InstanceNorm 1: single-pass sum / sum-of-squares, biased var, eps=1e-5.
    m1 = jnp.sum(acc, axis=-1, keepdims=True) * inv_hw
    v1 = jnp.sum(acc * acc, axis=-1, keepdims=True) * inv_hw - m1 * m1
    h = (acc - m1) * lax.rsqrt(v1 + EPS)
    h = jnp.maximum(h, 0.0)                         # ReLU

    # conv2 (1x1) as matmul over channels + bias.
    h2 = jnp.dot(w2_ref[...], h, preferred_element_type=jnp.float32)
    h2 = h2 + b2_ref[...]

    # InstanceNorm 2 + ReLU.
    m2 = jnp.sum(h2, axis=-1, keepdims=True) * inv_hw
    v2 = jnp.sum(h2 * h2, axis=-1, keepdims=True) * inv_hw - m2 * m2
    h2 = (h2 - m2) * lax.rsqrt(v2 + EPS)
    h2 = jnp.maximum(h2, 0.0)

    out_ref[0] = h2.astype(out_ref.dtype)


def hm_feature_block(x_nchw, w1, b1, w2, b2):
    """HmFeatureBlock forward pass.

    x_nchw: (N, Cin, H, W) float32
    w1:     (Cmid, Cin, 3, 3)   PyTorch conv1.weight (OIHW), Cmid = Cin // 2
    b1:     (Cmid,)             conv1.bias
    w2:     (Cmid, Cmid, 1, 1)  PyTorch conv2.weight (OIHW)
    b2:     (Cmid,)             conv2.bias
    returns (N, Cmid, H, W)
    """
    N, Cin, H, W = x_nchw.shape
    Cmid = Cin // 2
    HW = H * W
    HpW = (H + 6) * W

    # Contiguous, metadata-only reshape — no HBM copy, no transpose, no pad.
    x_flat = x_nchw.reshape(N, Cin, HW)

    # Tiny weight re-layouts (negligible): OIHW -> tap-major (Cmid, 9*Cin).
    w1_mat = jnp.transpose(w1, (0, 2, 3, 1)).reshape(Cmid, 9 * Cin)
    w2_mat = w2.reshape(Cmid, Cmid)
    b1_col = b1.reshape(Cmid, 1)
    b2_col = b2.reshape(Cmid, 1)

    # Explicit VMEM budget: double-buffered input/output blocks + padded scratch
    # + im2col + live intermediates + weights, with headroom (clamped to 32 MiB
    # so it also fits v7x's 64 MiB VMEM).
    block_bytes = 4 * (2 * Cin * HW + 2 * Cmid * HW + Cin * HpW
                       + 9 * Cin * HW + 6 * Cmid * HW
                       + Cmid * (9 * Cin + Cmid + 2))
    vmem_limit = int(min(32 * 1024 * 1024, max(4 * 1024 * 1024, 4 * block_bytes)))

    kernel = functools.partial(_hm_kernel, H=H, W=W)

    # TODO(synk): for N == 1 on v7x (2 TensorCores), split H into >=2 parallel
    # tiles with a two-pass InstanceNorm so both cores are used.
    out_flat = pl.pallas_call(
        kernel,
        out_shape=jax.ShapeDtypeStruct((N, Cmid, HW), x_nchw.dtype),
        grid=(N,),
        in_specs=[
            pl.BlockSpec((1, Cin, HW), lambda n: (n, 0, 0)),
            pl.BlockSpec((Cmid, 9 * Cin), lambda n: (0, 0)),
            pl.BlockSpec((Cmid, 1), lambda n: (0, 0)),
            pl.BlockSpec((Cmid, Cmid), lambda n: (0, 0)),
            pl.BlockSpec((Cmid, 1), lambda n: (0, 0)),
        ],
        out_specs=pl.BlockSpec((1, Cmid, HW), lambda n: (n, 0, 0)),
        scratch_shapes=[pltpu.VMEM((Cin, HpW), x_nchw.dtype)],
        compiler_params=pltpu.CompilerParams(
            dimension_semantics=("parallel",),
            vmem_limit_bytes=vmem_limit),
    )(x_flat, w1_mat, b1_col, w2_mat, b2_col)

    # Free metadata reshape back to NCHW (no transpose, no HBM copy).
    return out_flat.reshape(N, Cmid, H, W)


def _reference(x_nchw, w1, b1, w2, b2):
    """Pure-JAX reference matching the PyTorch forward (PyTorch OIHW weights)."""
    y = lax.conv_general_dilated(
        x_nchw, w1, window_strides=(1, 1), padding=((2, 2), (2, 2)),
        rhs_dilation=(2, 2), dimension_numbers=('NCHW', 'OIHW', 'NCHW'))
    y = y + b1[None, :, None, None]

    def inorm(t):
        m = t.mean(axis=(2, 3), keepdims=True)
        v = ((t - m) ** 2).mean(axis=(2, 3), keepdims=True)
        return (t - m) / jnp.sqrt(v + EPS)

    y = jnp.maximum(inorm(y), 0.0)
    w2_2d = w2.reshape(w2.shape[0], w2.shape[1])
    y2 = jnp.einsum('nchw,dc->ndhw', y, w2_2d) + b2[None, :, None, None]
    y2 = jnp.maximum(inorm(y2), 0.0)
    return y2


if __name__ == "__main__":
    key = jax.random.PRNGKey(0)
    N, Cin, H, W = 2, 4, 16, 16
    Cmid = Cin // 2

    k_x, k_w1, k_b1, k_w2, k_b2 = jax.random.split(key, 5)
    x = jax.random.normal(k_x, (N, Cin, H, W), jnp.float32)
    # Deterministic synthetic parameters in PyTorch-native (OIHW) layouts.
    w1 = jax.random.normal(k_w1, (Cmid, Cin, 3, 3), jnp.float32) * 0.2
    b1 = jax.random.normal(k_b1, (Cmid,), jnp.float32) * 0.1
    w2 = jax.random.normal(k_w2, (Cmid, Cmid, 1, 1), jnp.float32) * 0.2
    b2 = jax.random.normal(k_b2, (Cmid,), jnp.float32) * 0.1

    out = hm_feature_block(x, w1, b1, w2, b2)
    out = jax.block_until_ready(out)

    ref = jax.block_until_ready(_reference(x, w1, b1, w2, b2))
    np.testing.assert_allclose(np.asarray(out), np.asarray(ref),
                               atol=1e-4, rtol=1e-4)

    print("KERNEL_OK")
</pallas_src>

<mosaic_0001>
module attributes {stable_mosaic.version = 11 : i64} {
  func.func @_hm_kernel(%arg0: i32, %arg1: memref<1x4x256xf32, #tpu.memory_space<vmem>>, %arg2: memref<2x36xf32, #tpu.memory_space<vmem>>, %arg3: memref<2x1xf32, #tpu.memory_space<vmem>>, %arg4: memref<2x2xf32, #tpu.memory_space<vmem>>, %arg5: memref<2x1xf32, #tpu.memory_space<vmem>>, %arg6: memref<1x2x256xf32, #tpu.memory_space<vmem>>, %arg7: memref<4x352xf32, #tpu.memory_space<vmem>>) attributes {dimension_semantics = [#tpu.dimension_semantics<parallel>], iteration_bounds = array<i64: 2>, scalar_prefetch = 0 : i64, scratch_operands = 1 : i64, tpu.core_type = #tpu.core_type<tc>, window_params = [{transform_indices = @transform_0, window_bounds = array<i64: 1, 4, 256>}, {pipeline_mode = #tpu.pipeline_mode<synchronous>, transform_indices = @transform_1, window_bounds = array<i64: 2, 36>}, {pipeline_mode = #tpu.pipeline_mode<synchronous>, transform_indices = @transform_2, window_bounds = array<i64: 2, 1>}, {pipeline_mode = #tpu.pipeline_mode<synchronous>, transform_indices = @transform_3, window_bounds = array<i64: 2, 2>}, {pipeline_mode = #tpu.pipeline_mode<synchronous>, transform_indices = @transform_4, window_bounds = array<i64: 2, 1>}, {transform_indices = @transform_5, window_bounds = array<i64: 1, 2, 256>}]} {
    %c0 = arith.constant 0 : index
    %c0_0 = arith.constant 0 : index
    %c0_1 = arith.constant 0 : index
    %0 = vector.load %arg1[%c0, %c0_0, %c0_1] : memref<1x4x256xf32, #tpu.memory_space<vmem>>, vector<1x4x256xf32>
    %1 = vector.shape_cast %0 : vector<1x4x256xf32> to vector<4x256xf32>
    %cst = arith.constant 0.000000e+00 : f32
    %2 = vector.broadcast %cst : f32 to vector<4x352xf32>
    %c0_2 = arith.constant 0 : index
    %c0_3 = arith.constant 0 : index
    %3 = vector.load %arg7[%c0_2, %c0_3] : memref<4x352xf32, #tpu.memory_space<vmem>>, vector<4x352xf32>
    tpu.vector_store %arg7[%c0_2, %c0_3], %2 {strides = array<i32>} : memref<4x352xf32, #tpu.memory_space<vmem>>, vector<4x352xf32>,
    %c0_4 = arith.constant 0 : index
    %c48 = arith.constant 48 : index
    %4 = vector.load %arg7[%c0_4, %c48] : memref<4x352xf32, #tpu.memory_space<vmem>>, vector<4x256xf32>
    tpu.vector_store %arg7[%c0_4, %c48], %1 {strides = array<i32>} : memref<4x352xf32, #tpu.memory_space<vmem>>, vector<4x256xf32>,
    %c0_5 = arith.constant 0 : index
    %c0_6 = arith.constant 0 : index
    %5 = vector.load %arg7[%c0_5, %c0_6] : memref<4x352xf32, #tpu.memory_space<vmem>>, vector<4x352xf32>
    %6 = tpu.iota {dimensions = array<i32: 1>} : vector<4x256xi32>
    %c16_i32 = arith.constant 16 : i32
    %c0_i32 = arith.constant 0 : i32
    %7 = arith.cmpi eq, %c16_i32, %c0_i32 : i32
    %c1_i32 = arith.constant 1 : i32
    %8 = arith.select %7, %c1_i32, %c16_i32 : i32
    %9 = vector.broadcast %8 : i32 to vector<4x256xi32>
    %10 = arith.remsi %6, %9 : vector<4x256xi32>
    %c0_i32_7 = arith.constant 0 : i32
    %11 = vector.broadcast %c0_i32_7 : i32 to vector<4x256xi32>
    %12 = arith.cmpi ne, %10, %11 : vector<4x256xi32>
    %c0_i32_8 = arith.constant 0 : i32
    %13 = vector.broadcast %c0_i32_8 : i32 to vector<4x256xi32>
    %14 = arith.cmpi slt, %10, %13 : vector<4x256xi32>
    %c0_i32_9 = arith.constant 0 : i32
    %15 = arith.cmpi slt, %8, %c0_i32_9 : i32
    %16 = vector.broadcast %15 : i1 to vector<4x256xi1>
    %17 = vector.broadcast %16 : vector<4x256xi1> to vector<4x256xi1>
    %18 = arith.xori %14, %17 : vector<4x256xi1>
    %19 = arith.andi %18, %12 : vector<4x256xi1>
    %20 = vector.broadcast %8 : i32 to vector<4x256xi32>
    %21 = arith.addi %10, %20 : vector<4x256xi32>
    %22 = arith.select %19, %21, %10 : vector<4x256xi1>, vector<4x256xi32>
    %c2_i32 = arith.constant 2 : i32
    %23 = vector.broadcast %c2_i32 : i32 to vector<4x256xi32>
    %24 = arith.cmpi sge, %22, %23 : vector<4x256xi32>
    %c14_i32 = arith.constant 14 : i32
    %25 = vector.broadcast %c14_i32 : i32 to vector<4x256xi32>
    %26 = arith.cmpi slt, %22, %25 : vector<4x256xi32>
    %27 = vector.extract_strided_slice %5 {offsets = [0, 14], sizes = [4, 256], strides = [1, 1]} : vector<4x352xf32> to vector<4x256xf32>
    %cst_10 = arith.constant 0.000000e+00 : f32
    %28 = vector.broadcast %cst_10 : f32 to vector<4x256xf32>
    %29 = arith.select %24, %27, %28 : vector<4x256xi1>, vector<4x256xf32>
    %30 = vector.extract_strided_slice %5 {offsets = [0, 16], sizes = [4, 256], strides = [1, 1]} : vector<4x352xf32> to vector<4x256xf32>
    %31 = vector.extract_strided_slice %5 {offsets = [0, 18], sizes = [4, 256], strides = [1, 1]} : vector<4x352xf32> to vector<4x256xf32>
    %cst_11 = arith.constant 0.000000e+00 : f32
    %32 = vector.broadcast %cst_11 : f32 to vector<4x256xf32>
    %33 = arith.select %26, %31, %32 : vector<4x256xi1>, vector<4x256xf32>
    %34 = vector.extract_strided_slice %5 {offsets = [0, 46], sizes = [4, 256], strides = [1, 1]} : vector<4x352xf32> to vector<4x256xf32>
    %cst_12 = arith.constant 0.000000e+00 : f32
    %35 = vector.broadcast %cst_12 : f32 to vector<4x256xf32>
    %36 = arith.select %24, %34, %35 : vector<4x256xi1>, vector<4x256xf32>
    %37 = vector.extract_strided_slice %5 {offsets = [0, 48], sizes = [4, 256], strides = [1, 1]} : vector<4x352xf32> to vector<4x256xf32>
    %38 = vector.extract_strided_slice %5 {offsets = [0, 50], sizes = [4, 256], strides = [1, 1]} : vector<4x352xf32> to vector<4x256xf32>
    %cst_13 = arith.constant 0.000000e+00 : f32
    %39 = vector.broadcast %cst_13 : f32 to vector<4x256xf32>
    %40 = arith.select %26, %38, %39 : vector<4x256xi1>, vector<4x256xf32>
    %41 = vector.extract_strided_slice %5 {offsets = [0, 78], sizes = [4, 256], strides = [1, 1]} : vector<4x352xf32> to vector<4x256xf32>
    %cst_14 = arith.constant 0.000000e+00 : f32
    %42 = vector.broadcast %cst_14 : f32 to vector<4x256xf32>
    %43 = arith.select %24, %41, %42 : vector<4x256xi1>, vector<4x256xf32>
    %44 = vector.extract_strided_slice %5 {offsets = [0, 80], sizes = [4, 256], strides = [1, 1]} : vector<4x352xf32> to vector<4x256xf32>
    %45 = vector.extract_strided_slice %5 {offsets = [0, 82], sizes = [4, 256], strides = [1, 1]} : vector<4x352xf32> to vector<4x256xf32>
    %cst_15 = arith.constant 0.000000e+00 : f32
    %46 = vector.broadcast %cst_15 : f32 to vector<4x256xf32>
    %47 = arith.select %26, %45, %46 : vector<4x256xi1>, vector<4x256xf32>
    %48 = tpu.concatenate %29, %30, %33, %36, %37, %40, %43, %44, %47 in 0 : vector<4x256xf32>, vector<4x256xf32>, vector<4x256xf32>, vector<4x256xf32>, vector<4x256xf32>, vector<4x256xf32>, vector<4x256xf32>, vector<4x256xf32>, vector<4x256xf32> -> vector<36x256xf32>
    %c0_16 = arith.constant 0 : index
    %c0_17 = arith.constant 0 : index
    %49 = vector.load %arg2[%c0_16, %c0_17] : memref<2x36xf32, #tpu.memory_space<vmem>>, vector<2x36xf32>
    %cst_18 = arith.constant dense<0.000000e+00> : vector<2x256xf32>
    %50 = tpu.matmul %49, %48, %cst_18 {dimension_numbers = #tpu.dot_dimension_numbers<[1], [0], [0], [1], [0, 0, 1, 1], [], []>} : vector<2x36xf32>, vector<36x256xf32>, vector<2x256xf32> -> vector<2x256xf32>
    %c0_19 = arith.constant 0 : index
    %c0_20 = arith.constant 0 : index
    %51 = vector.load %arg3[%c0_19, %c0_20] : memref<2x1xf32, #tpu.memory_space<vmem>>, vector<2x1xf32>
    %52 = vector.broadcast %51 : vector<2x1xf32> to vector<2x256xf32>
    %53 = arith.addf %50, %52 : vector<2x256xf32>
    %cst_21 = arith.constant dense<0.000000e+00> : vector<2xf32>
    %54 = vector.multi_reduction <add>, %53, %cst_21 [1] : vector<2x256xf32> to vector<2xf32>
    %55 = vector.shape_cast %54 : vector<2xf32> to vector<2x1xf32>
    %cst_22 = arith.constant 3.906250e-03 : f32
    %56 = vector.broadcast %cst_22 : f32 to vector<2x1xf32>
    %57 = arith.mulf %55, %56 : vector<2x1xf32>
    %58 = arith.mulf %53, %53 : vector<2x256xf32>
    %cst_23 = arith.constant dense<0.000000e+00> : vector<2xf32>
    %59 = vector.multi_reduction <add>, %58, %cst_23 [1] : vector<2x256xf32> to vector<2xf32>
    %60 = vector.shape_cast %59 : vector<2xf32> to vector<2x1xf32>
    %cst_24 = arith.constant 3.906250e-03 : f32
    %61 = vector.broadcast %cst_24 : f32 to vector<2x1xf32>
    %62 = arith.mulf %60, %61 : vector<2x1xf32>
    %63 = arith.mulf %57, %57 : vector<2x1xf32>
    %64 = arith.subf %62, %63 : vector<2x1xf32>
    %65 = vector.broadcast %57 : vector<2x1xf32> to vector<2x256xf32>
    %66 = arith.subf %53, %65 : vector<2x256xf32>
    %cst_25 = arith.constant 9.99999974E-6 : f32
    %67 = vector.broadcast %cst_25 : f32 to vector<2x1xf32>
    %68 = arith.addf %64, %67 : vector<2x1xf32>
    %69 = math.rsqrt %68 : vector<2x1xf32>
    %70 = vector.broadcast %69 : vector<2x1xf32> to vector<2x256xf32>
    %71 = arith.mulf %66, %70 : vector<2x256xf32>
    %cst_26 = arith.constant 0.000000e+00 : f32
    %72 = vector.broadcast %cst_26 : f32 to vector<2x256xf32>
    %73 = arith.maximumf %71, %72 : vector<2x256xf32>
    %c0_27 = arith.constant 0 : index
    %c0_28 = arith.constant 0 : index
    %74 = vector.load %arg4[%c0_27, %c0_28] : memref<2x2xf32, #tpu.memory_space<vmem>>, vector<2x2xf32>
    %cst_29 = arith.constant dense<0.000000e+00> : vector<2x256xf32>
    %75 = tpu.matmul %74, %73, %cst_29 {dimension_numbers = #tpu.dot_dimension_numbers<[1], [0], [0], [1], [0, 0, 1, 1], [], []>} : vector<2x2xf32>, vector<2x256xf32>, vector<2x256xf32> -> vector<2x256xf32>
    %c0_30 = arith.constant 0 : index
    %c0_31 = arith.constant 0 : index
    %76 = vector.load %arg5[%c0_30, %c0_31] : memref<2x1xf32, #tpu.memory_space<vmem>>, vector<2x1xf32>
    %77 = vector.broadcast %76 : vector<2x1xf32> to vector<2x256xf32>
    %78 = arith.addf %75, %77 : vector<2x256xf32>
    %cst_32 = arith.constant dense<0.000000e+00> : vector<2xf32>
    %79 = vector.multi_reduction <add>, %78, %cst_32 [1] : vector<2x256xf32> to vector<2xf32>
    %80 = vector.shape_cast %79 : vector<2xf32> to vector<2x1xf32>
    %cst_33 = arith.constant 3.906250e-03 : f32
    %81 = vector.broadcast %cst_33 : f32 to vector<2x1xf32>
    %82 = arith.mulf %80, %81 : vector<2x1xf32>
    %83 = arith.mulf %78, %78 : vector<2x256xf32>
    %cst_34 = arith.constant dense<0.000000e+00> : vector<2xf32>
    %84 = vector.multi_reduction <add>, %83, %cst_34 [1] : vector<2x256xf32> to vector<2xf32>
    %85 = vector.shape_cast %84 : vector<2xf32> to vector<2x1xf32>
    %cst_35 = arith.constant 3.906250e-03 : f32
    %86 = vector.broadcast %cst_35 : f32 to vector<2x1xf32>
    %87 = arith.mulf %85, %86 : vector<2x1xf32>
    %88 = arith.mulf %82, %82 : vector<2x1xf32>
    %89 = arith.subf %87, %88 : vector<2x1xf32>
    %90 = vector.broadcast %82 : vector<2x1xf32> to vector<2x256xf32>
    %91 = arith.subf %78, %90 : vector<2x256xf32>
    %cst_36 = arith.constant 9.99999974E-6 : f32
    %92 = vector.broadcast %cst_36 : f32 to vector<2x1xf32>
    %93 = arith.addf %89, %92 : vector<2x1xf32>
    %94 = math.rsqrt %93 : vector<2x1xf32>
    %95 = vector.broadcast %94 : vector<2x1xf32> to vector<2x256xf32>
    %96 = arith.mulf %91, %95 : vector<2x256xf32>
    %cst_37 = arith.constant 0.000000e+00 : f32
    %97 = vector.broadcast %cst_37 : f32 to vector<2x256xf32>
    %98 = arith.maximumf %96, %97 : vector<2x256xf32>
    %c0_38 = arith.constant 0 : index
    %c0_39 = arith.constant 0 : index
    %c0_40 = arith.constant 0 : index
    %99 = vector.load %arg6[%c0_38, %c0_39, %c0_40] : memref<1x2x256xf32, #tpu.memory_space<vmem>>, vector<1x2x256xf32>
    %100 = vector.shape_cast %99 : vector<1x2x256xf32> to vector<2x256xf32>
    %101 = vector.shape_cast %98 : vector<2x256xf32> to vector<1x2x256xf32>
    tpu.vector_store %arg6[%c0_38, %c0_39, %c0_40], %101 {strides = array<i32>} : memref<1x2x256xf32, #tpu.memory_space<vmem>>, vector<1x2x256xf32>,
    return
  }
  func.func @transform_0(%arg0: i32) -> (i32, i32, i32) {
    %c0_i32 = arith.constant 0 : i32
    %c0_i32_0 = arith.constant 0 : i32
    %c0_i32_1 = arith.constant 0 : i32
    return %arg0, %c0_i32, %c0_i32_0 : i32, i32, i32
  }
  func.func @transform_1(%arg0: i32) -> (i32, i32) {
    %c0_i32 = arith.constant 0 : i32
    %c0_i32_0 = arith.constant 0 : i32
    %c0_i32_1 = arith.constant 0 : i32
    return %c0_i32, %c0_i32_0 : i32, i32
  }
  func.func @transform_2(%arg0: i32) -> (i32, i32) {
    %c0_i32 = arith.constant 0 : i32
    %c0_i32_0 = arith.constant 0 : i32
    %c0_i32_1 = arith.constant 0 : i32
    return %c0_i32, %c0_i32_0 : i32, i32
  }
  func.func @transform_3(%arg0: i32) -> (i32, i32) {
    %c0_i32 = arith.constant 0 : i32
    %c0_i32_0 = arith.constant 0 : i32
    %c0_i32_1 = arith.constant 0 : i32
    return %c0_i32, %c0_i32_0 : i32, i32
  }
  func.func @transform_4(%arg0: i32) -> (i32, i32) {
    %c0_i32 = arith.constant 0 : i32
    %c0_i32_0 = arith.constant 0 : i32
    %c0_i32_1 = arith.constant 0 : i32
    return %c0_i32, %c0_i32_0 : i32, i32
  }
  func.func @transform_5(%arg0: i32) -> (i32, i32, i32) {
    %c0_i32 = arith.constant 0 : i32
    %c0_i32_0 = arith.constant 0 : i32
    %c0_i32_1 = arith.constant 0 : i32
    return %arg0, %c0_i32, %c0_i32_0 : i32, i32, i32
  }
}

</mosaic_0001>

<bundles_post_ra>
// kernel: tpu_custom_call.1
= control target key start
LH: loop header
LB: loop body
LE: loop exit
PB: predicated region body
PF: predicated region fallthrough
CT: control target
= control target key end

     0   :  { %10 = vsyncpa [#allocation4], 0  ;;  %s1294_s0 = inlined_call_operand.hbm [shape: f32[2,4,256], index: 0, kind: input, shape index: {}]   ;;  %s1295_s1 = inlined_call_operand.vmem [shape: f32[2,36], index: 1, kind: input, shape index: {}]   ;;  %s1296_s2 = inlined_call_operand.vmem [shape: f32[2,1], index: 2, kind: input, shape index: {}]   ;;  %s1297_s3 = inlined_call_operand.vmem [shape: f32[2,2], index: 3, kind: input, shape index: {}]   ;;  %s1298_s4 = inlined_call_operand.vmem [shape: f32[2,1], index: 4, kind: input, shape index: {}]   ;;  %s1299_s5 = inlined_call_operand.hbm [shape: f32[2,2,256], index: 5, kind: output, shape index: {}]  }
   0x1   :  { %12 = vsyncpa [#allocation4 + $0x1], 0 }
   0x2   :  { %13 = vsyncpa [#allocation5], 0 }
   0x3   :  { %15 = vsyncpa [#allocation5 + $0x1], 0  ;;  %s1028_s18 = smov 0   ;;  %s1030_s19 = smov 0  }
   0x4   :  { %s1032_s20 = smov 0   ;;  %s1034_s21 = smov 0  }
   0x5 LB: > { %s1049_s22 = sadd.s32 4294967295, %s983_s21   ;;  %s750_s23 = sadd.s32 4294967294, %s983_s21   ;;  %s983_s21 = sphi %s1034_s21, %s1322_s21   ;;  %s979_s20 = sphi %s1032_s20, %s1321_s20   ;;  %s975_s19 = sphi %s1030_s19, %s1320_s19   ;;  %s971_s18 = sphi %s1028_s18, %s1319_s18  }
   0x6   : > { %s1053_s24 = sadd.s32 1, %s983_s21   ;;  %s28_s25 = sadd.s32 1, %s979_s20 }
   0x7   : > { %s25_s26 = ssub.s32 %s983_s21, %s1053_s24  ;;  %p35_p0 = scmp.ne.s32.totalorder %s979_s20, %s975_s19 }
   0x8   : > { %p26_p1 = scmp.eq.s32.totalorder %s25_s26, 0  ;;  %p36_p2 = scmp.eq.s32.totalorder %s983_s21, 0 }
   0x9   : > { %p41_p3 = scmp.ne.s32.totalorder %s975_s19, %s971_s18  ;;  %p42_p4 = scmp.eq.s32.totalorder %s1049_s22, 0 }
   0xa   : > { %s1065_s27 = scalar_select %p26_p1, %s979_s20, %s28_s25  }
   0xb   : > { %p1067_p5 = por %p36_p2, %p35_p0  ;;  %p1071_p6 = por %p42_p4, %p41_p3 }
   0xc   : > { %p149_p7 = scmp.eq.s32.totalorder %s1049_s22, 1  ;;  %p155_p8 = scmp.eq.s32.totalorder %s750_s23, 1 }
   0xd   : > { %p793_p10 = scmp.lt.s32.totalorder %s983_s21, 2  ;;  %s187_s7 = sand.u32 1, %s979_s20  }
   0xe   : > { %p1078_p11 = por %p149_p7, %p35_p0  ;;  %p1082_p12 = por %p155_p8, %p41_p3 }
   0xf   : > { %s771_s8 = sshll.u32 %s983_s21, 7  ;;  %s753_s9 = sshll.u32 %s187_s7, 3 }
  0x10   : > { %s1303_s30 = scalar_select %p1078_p11, 1, 0 }
  0x11   : > { %s1304_s6 = scalar_select %p1082_p12, 1, 0 }
  0x12   : > { %s1091_s12 = scalar_lea.hbm %s1294_s0, %s771_s8  ;;  %s191_s13 = scalar_lea.vmem [#allocation3], %s753_s9 }
  0x13   : > { %s199_s14 = sshll.u32 %s191_s13, 4  ;;  %p1095_p13 = pnand %p793_p10, %p1067_p5  ;;  %s1099_s14 = int_to_ptr.vmem [resolvable:$true] %s199_s14 }
  0x14   : > { %s188_s16 = scalar_lea.sflag [#allocation4], %s187_s7  ;;  %s887_s17 = scalar_lea.hbm %s1091_s12, 128 }
  0x15   : > { %p888_p2 = scmp.ne.s32.totalorder %s1091_s12, %s887_s17  ;;  %p889_p3 = pneg %p1095_p13 }
  0x16   : > { %s892_s26 = scalar_lea.hbm %s1294_s0, 256  ;;  %p893_p5 = scmp.lt.u32.totalorder %s1091_s12, %s1294_s0 }
  0x17   : > { %p890_p4 = pnand %p889_p3, %p888_p2  ;;  %p894_p8 = scmp.lt.u32.totalorder %s892_s26, %s887_s17 }
  0x18   : > { %p896_p9 = scmp.lt.u32.totalorder %s887_s17, %s1091_s12 }
  0x19   : > { %p891_p7 = pneg %p890_p4  ;;  %p895_p10 = por %p894_p8, %p893_p5 }
  0x1b   : > { %p897_p0 = por %p896_p9, %p895_p10 }
  0x1d   : > { %p898_p1 = pnand %p897_p0, %p891_p7 }
  0x1f   : > { %901 = shalt.err (!%p898_p1)
}
  0x20   : > { %s902_s7 = scalar_lea.vmem %s1099_s14, 128  ;;  %s985_s9 = smov [#allocation3]  }
  0x21   : > { %p903_p2 = scmp.ne.s32.totalorder %s1099_s14, %s902_s7  ;;  %s907_s10 = sshll.u32 %s985_s9, 4  ;;  %s908_s10 = int_to_ptr.vmem [resolvable:$false] %s907_s10 }
  0x22   : > { %s909_s11 = scalar_lea.vmem %s908_s10, 256  ;;  %p910_p11 = scmp.lt.s32.totalorder %s1099_s14, %s908_s10 }
  0x23   : > { %p905_p4 = pnand %p903_p2, %p889_p3  ;;  %p911_p5 = scmp.lt.s32.totalorder %s909_s11, %s902_s7 }
  0x25   : > { %p906_p12 = pneg %p905_p4  ;;  %p912_p8 = por %p911_p5, %p910_p11 }
  0x27   : > { %p913_p9 = pnand %p912_p8, %p906_p12 }
  0x29   : > { %916 = shalt.err (!%p913_p9)
}
  0x2a   : > { %788 = dma.hbm_to_vmem [thread:$0]  (!%p1095_p13), %s1091_s12, 128, %s1099_s14, %s188_s16  }
  0x2b   : > { %p1306_p0 = scmp.lt.s32.totalorder %s983_s21, 3  ;;  %p1307_p1 = scmp.ge.s32.totalorder %s983_s21, 1 }
  0x2d   : > { %p205_p3 = pnand %p1307_p1, %p1306_p0 }
  0x2e   : > { %s1133_s13 = sand.u32 (!%p205_p3), 1, %s975_s19  }
  0x2f   : > { %208 = sbr.rel (%p205_p3) target bundleno = 1124 (0x464), region = 40  ;;  %s757_s17 = sshll.u32 (!%p205_p3), %s1133_s13, 3 }
  0x30   : > { %s211_s23 = scalar_lea.sflag (!%p205_p3), [#allocation4], %s1133_s13  ;;  %s214_s25 = scalar_lea.vmem (!%p205_p3), [#allocation3], %s757_s17 }
  0x36   : > { %962 = dma.done.wait (%p1071_p6), %s211_s23, 128  }
  0x37   : > { %964 = vsyncadd (%p1071_p6), %s211_s23, 4294967168  ;;  %vm243_vm0 = vcmask 781312   ;;  %v986_v0 = vmov 0.0   ;;  %v241_v1 = vld [vmem:[%s214_s25] sm:$0xff]  ;;  %s987_s12 = smov 48   ;;  %vm253_vm1 = vcmask 1043840   ;;  %v261_v16 = vlaneseq }
  0x38   : > { %242 = vst [vmem:[#allocation2] sm:$0xff] %v986_v0  ;;  %244 = vst.msk [vmem:[#allocation2 + $0x8] sm:$0xf] %vm243_vm0, %v986_v0  ;;  %509 = vmatprep.mubr.f32.mxu0 %v986_v0  ;;  %622 = vmatprep.mubr.f32.mxu1 %v986_v0  ;;  %vm254_vm2 = vcmask 1047556   ;;  %vm249_vm3 = vcmask 392192   ;;  %vm257_vm4 = vcmask 388096  }
  0x39   : > { %246 = vrot.lane.b32.xlu0 %v241_v1, %s987_s12  ;;  %vm255_vm5 = vmor %vm254_vm2, %vm253_vm1  ;;  %s988_s29 = smov 110   ;;  %s989_s14 = smov 82   ;;  %v995_v12 = vmov 0   ;;  %v429_v13 = vld [vmem:[%s1296_s2] sm:$0x3]  ;;  %v262_v19 = vand.u32 127, %v261_v16 }
  0x3a   : > { %s990_s15 = smov 78   ;;  %s991_s16 = smov 114   ;;  %878 = vset.pattern.permute.xlu0 %v995_v12  ;;  %879 = vset.pattern.permute.xlu1 %v995_v12  ;;  %vm327_vm6 = vcmask 670720   ;;  %vm381_vm7 = vcmask 916480   ;;  %vm353_vm8 = vcmask 408576   ;;  %vm419_vm10 = vcmask 1043456  }
  0x3b   : > { %s992_s26 = smov 50   ;;  %s993_s28 = smov 80   ;;  %v263_v22 = vadd.s32 128, %v262_v19  ;;  %v268_v25 = vand.u32 15, %v262_v19  ;;  %vm301_vm11 = vcmask 932864   ;;  %vm314_vm13 = vcmask 900096  }
  0x3c   : > { %s994_s8 = smov 112   ;;  %s996_s7 = smov 46   ;;  %vm340_vm15 = vcmask 637952   ;;  %vm398_vm0 = vcmask 654336   ;;  %vm366_vm2 = vcmask 375808  }
  0x3d   : > { %v275_v26 = vand.u32 15, %v263_v22  ;;  %vm1154_vm9 = vcmp.ge.s32.totalorder %v268_v25, 2  ;;  %vm1169_vm1 = vcmp.lt.s32.totalorder %v268_v25, 14  ;;  %s666_s9 = scalar_lea.sflag [#allocation5], %s1133_s13  ;;  %p1316_p11 = scmp.ne.s32.totalorder %s1303_s30, 0 }
  0x3f   : > { %vm1158_vm12 = vcmp.ge.s32.totalorder %v275_v26, 2  ;;  %vm1164_vm14 = vcmp.lt.s32.totalorder %v275_v26, 14 }
  0xab   : > { %v247_v2 = vpop.permute.xlu0 %246 }
  0xac   : > { %v248_v3 = vrot.slane %v247_v2, 4 }
  0xae   : > { %v250_v4 = vsel %vm249_vm3, %v248_v3, %v247_v2  ;;  %258 = vst.msk [vmem:[#allocation2 + $0x8] sm:$0xf] %vm257_vm4, %v248_v3  ;;  %vm516_vm4 = vcmask 1041408  }
  0xaf   : > { %256 = vst.msk [vmem:[#allocation2] sm:$0xff] %vm255_vm5, %v250_v4  ;;  %vm548_vm5 = vcmask 15360  }
  0xb5   : > { %v260_v6 = vld [vmem:[#allocation2 + $0x8] sm:$0xf] }
  0xb6   : > { %v259_v5 = vld [vmem:[#allocation2] sm:$0xff]  ;;  %v374_v7 = vcombine.low %v260_v6, %v260_v6 }
  0xb7   : > { %308 = vrot.lane.b32.xlu0 %v259_v5, %s988_s29  ;;  %321 = vrot.lane.b32.xlu1 %v259_v5, %s989_s14  ;;  %v294_v9 = vcombine.high %v259_v5, %v259_v5  ;;  %v373_v11 = vcombine.low %v259_v5, %v259_v5 }
  0xb8   : > { %v843_v8 = vpack.i.bf16 %v374_v7, %v259_v5 }
  0xb9   : > { %v853_v10 = vpack.i.bf16 %v260_v6, %v294_v9 }
  0xbb   : > { %334 = vrot.lane.b32.xlu0 %v259_v5, %s990_s15  ;;  %295 = vrot.lane.b32.xlu1 %v259_v5, %s991_s16 }
  0xbf   : > { %347 = vrot.lane.b32.xlu0 %v259_v5, %s992_s26  ;;  %392 = vrot.lane.b32.xlu1 %v259_v5, %s993_s28 }
  0xc3   : > { %844 = vrot.lane.b32.xlu0 %v843_v8, %s987_s12  ;;  %839 = vrot.lane.b32.xlu1 %v843_v8, %s994_s8 }
  0xc7   : > { %854 = vrot.lane.b32.xlu1 %v853_v10, %s991_s16  ;;  %849 = vrot.lane.b32.xlu0 %v853_v10, %s989_s14  ;;  %s758_s14 = sshll.u32 %s1133_s13, 2 }
  0xc8   : > { %s240_s16 = scalar_lea.vmem [#allocation6], %s758_s14 }
  0xcb   : > { %375 = vrot.lane.b32.xlu1 %v373_v11, %s994_s8  ;;  %859 = vrot.lane.b32.xlu0 %v853_v10, %s988_s29 }
  0xcf   : > { %869 = vrot.lane.b32.xlu1 %v853_v10, %s992_s26  ;;  %864 = vrot.lane.b32.xlu0 %v853_v10, %s990_s15  ;;  %s772_s15 = sshll.u32 %s1049_s22, 6  ;;  %s680_s26 = sshll.u32 %s240_s16, 4  ;;  %s1252_s26 = int_to_ptr.vmem [resolvable:$true] %s680_s26 }
  0xd0   : > { %s917_s10 = scalar_lea.vmem %s1252_s26, 64  ;;  %s997_s22 = smov [#allocation6]  }
  0xd1   : > { %p918_p6 = scmp.ne.s32.totalorder %s1252_s26, %s917_s10  ;;  %s921_s11 = sshll.u32 %s997_s22, 4  ;;  %s922_s11 = int_to_ptr.vmem [resolvable:$false] %s921_s11 }
  0xd2   : > { %s923_s17 = scalar_lea.vmem %s922_s11, 128  ;;  %p924_p7 = scmp.lt.s32.totalorder %s1252_s26, %s922_s11 }
  0xd3   : > { %874 = vrot.lane.b32.xlu1 %v853_v10, %s993_s28  ;;  %409 = vrot.lane.b32.xlu0 %v373_v11, %s987_s12  ;;  %p919_p12 = pnand %p918_p6, %p1316_p11  ;;  %p925_p10 = scmp.lt.s32.totalorder %s923_s17, %s917_s10 }
  0xd5   : > { %p920_p13 = pneg %p919_p12  ;;  %p926_p2 = por %p925_p10, %p924_p7 }
  0xd7   : > { %362 = vrot.lane.b32.xlu1 %v294_v9, %s996_s7  ;;  %364 = vrot.lane.b32.xlu0 %v260_v6, %s996_s7  ;;  %p927_p4 = pnand %p926_p2, %p920_p13 }
  0xdb   : > { %360 = vrot.lane.b32.xlu1 %v259_v5, %s996_s7  ;;  %432 = vperm.xlu0 %878, %v429_v13   ;;  %s1250_s7 = scalar_lea.hbm %s1299_s5, %s772_s15 }
 0x129   : > { %v309_v14 = vpop.permute.xlu0 %308  ;;  %v322_v15 = vpop.permute.xlu1 %321 }
 0x12d   : > { %v1148_v17 = vpop.permute.xlu0 %334  ;;  %v296_v18 = vpop.permute.xlu1 %295 }
 0x131   : > { %v348_v20 = vpop.permute.xlu0 %347  ;;  %v1150_v21 = vpop.permute.xlu1 %392 }
 0x135   : > { %v1152_v23 = vpop.permute.xlu0 %844  ;;  %v840_v24 = vpop.permute.xlu1 %839 }
 0x136   : > { %v842_v34 = vunpack.i.h.bf16 %v840_v24  ;;  %v841_v35 = vunpack.i.l.bf16 %v840_v24  ;;  %v847_v49 = vunpack.i.h.bf16 %v1152_v23  ;;  %v846_v50 = vunpack.i.l.bf16 %v1152_v23 }
 0x138   : > { %v383_v52 = vsel %vm381_vm7, %v841_v35, %v842_v34  ;;  %v416_v25 = vsel %vm249_vm3, %v846_v50, %v847_v49 }
 0x139   : > { %v855_v27 = vpop.permute.xlu1 %854  ;;  %v850_v28 = vpop.permute.xlu0 %849 }
 0x13a   : > { %v857_v30 = vunpack.i.h.bf16 %v855_v27  ;;  %v856_v31 = vunpack.i.l.bf16 %v855_v27  ;;  %v852_v32 = vunpack.i.h.bf16 %v850_v28  ;;  %v851_v33 = vunpack.i.l.bf16 %v850_v28 }
 0x13c   : > { %v328_v37 = vsel %vm327_vm6, %v322_v15, %v851_v33  ;;  %v329_v38 = vsel %vm327_vm6, %v851_v33, %v852_v32  ;;  %v303_v40 = vsel %vm301_vm11, %v856_v31, %v857_v30  ;;  %v302_v44 = vsel %vm301_vm11, %v296_v18, %v856_v31 }
 0x13d   : > { %v376_v41 = vpop.permute.xlu1 %375  ;;  %v860_v42 = vpop.permute.xlu0 %859  ;;  %v333_v47 = vsel %vm1158_vm12, %v329_v38, 0.0  ;;  %v332_v48 = vsel %vm1154_vm9, %v328_v37, 0.0  ;;  %v307_v51 = vsel %vm1158_vm12, %v303_v40, 0.0  ;;  %v306_v55 = vsel %vm1154_vm9, %v302_v44, 0.0 }
 0x13e   : > { %v862_v45 = vunpack.i.h.bf16 %v860_v42  ;;  %v861_v46 = vunpack.i.l.bf16 %v860_v42  ;;  %v382_v53 = vsel %vm381_vm7, %v376_v41, %v841_v35  ;;  %v389_v60 = vrot.slane %v333_v47, 4  ;;  %v428_v41 = vld [vmem:[%s1295_s1] sm:$0x3] }
 0x13f   : > { %v388_v62 = vrot.slane %v332_v48, 4  ;;  %v421_v3 = vsel %vm419_vm10, %v307_v51, %v383_v52  ;;  %v420_v5 = vsel %vm419_vm10, %v306_v55, %v382_v53 }
 0x140   : > { %v316_v54 = vsel %vm314_vm13, %v861_v46, %v862_v45  ;;  %v315_v56 = vsel %vm314_vm13, %v309_v14, %v861_v46 }
 0x141   : > { %v870_v57 = vpop.permute.xlu1 %869  ;;  %v865_v58 = vpop.permute.xlu0 %864  ;;  %v320_v59 = vsel %vm1164_vm14, %v316_v54, 0.0  ;;  %v319_v61 = vsel %vm1169_vm1, %v315_v56, 0.0  ;;  %v542_v54 = vld [vmem:[%s1298_s4] sm:$0x3] }
 0x142   : > { %v872_v63 = vunpack.i.h.bf16 %v870_v57  ;;  %v871_v0 = vunpack.i.l.bf16 %v870_v57  ;;  %v867_v1 = vunpack.i.h.bf16 %v865_v58  ;;  %v866_v2 = vunpack.i.l.bf16 %v865_v58 }
 0x143   : > { %v423_v4 = vsel %vm419_vm10, %v320_v59, %v389_v60  ;;  %v422_v6 = vsel %vm419_vm10, %v319_v61, %v388_v62 }
 0x144   : > { %v354_v7 = vsel %vm353_vm8, %v348_v20, %v871_v0  ;;  %v355_v8 = vsel %vm353_vm8, %v871_v0, %v872_v63  ;;  %v341_v9 = vsel %vm340_vm15, %v1148_v17, %v866_v2  ;;  %v342_v10 = vsel %vm340_vm15, %v866_v2, %v867_v1 }
 0x145   : > { %v875_v11 = vpop.permute.xlu1 %874  ;;  %v358_v12 = vsel %vm1154_vm9, %v354_v7, 0.0  ;;  %v410_v13 = vpop.permute.xlu0 %409  ;;  %v346_v14 = vsel %vm1164_vm14, %v342_v10, 0.0  ;;  %v773_v15 = vpack.c.bf16 %v423_v4, %v421_v3  ;;  %v345_v16 = vsel %vm1169_vm1, %v341_v9, 0.0 }
 0x146   : > { %v877_v18 = vunpack.i.h.bf16 %v875_v11  ;;  %v876_v19 = vunpack.i.l.bf16 %v875_v11  ;;  %v415_v20 = vsel %vm249_vm3, %v410_v13, %v846_v50  ;;  %v406_v22 = vrot.slane %v346_v14, 4 }
 0x147   : > { %774 = vmatprep.subr.bf16.mxu0 %v773_v15  ;;  %v775_v17 = vpack.c.bf16 %v422_v6, %v420_v5  ;;  %v359_v23 = vsel %vm1158_vm12, %v355_v8, 0.0  ;;  %v405_v24 = vrot.slane %v345_v16, 4  ;;  %v426_v28 = vsel %vm419_vm10, %v358_v12, %v415_v20  ;;  %v541_v5 = vld [vmem:[%s1297_s3] sm:$0x3] }
 0x148   : > { %v399_v26 = vsel %vm398_vm0, %v1150_v21, %v876_v19  ;;  %v400_v27 = vsel %vm398_vm0, %v876_v19, %v877_v18  ;;  %v427_v32 = vsel %vm419_vm10, %v359_v23, %v416_v25  ;;  %vm435_vm3 = vcmask 293888  }
 0x149   : > { %776 = vmatpush1.bf16.msra.mxu0 %v775_v17  ;;  %v363_v29 = vpop.permute.xlu1 %362  ;;  %v365_v30 = vpop.permute.xlu0 %364  ;;  %v425_v31 = vsel %vm419_vm10, %v400_v27, %v406_v22  ;;  %v424_v33 = vsel %vm419_vm10, %v399_v26, %v405_v24 }
 0x14a   : > { %v368_v34 = vsel %vm366_vm2, %v363_v29, %v365_v30  ;;  %v777_v35 = vpack.c.bf16 %v427_v32, %v425_v31  ;;  %v779_v36 = vpack.c.bf16 %v426_v28, %v424_v33 }
 0x14b   : > { %v372_v21 = vsel %vm1164_vm14, %v368_v34, 0.0 }
 0x14c   : > { %778 = vmatprep.subr.bf16.mxu0 %v777_v35 }
 0x14d   : > { %v361_v37 = vpop.permute.xlu1 %360  ;;  %780 = vmatpush1.bf16.msra.mxu0 %v779_v36 }
 0x14e   : > { %v367_v38 = vsel %vm366_vm2, %v361_v37, %v363_v29  ;;  %759 = vmatprep.subr.msk.mxu0 %vm419_vm10, %v372_v21 }
 0x14f   : > { %v371_v40 = vsel %vm1169_vm1, %v367_v38, 0.0 }
 0x151   : > { %760 = vmatpush1.msk.msra.mxu0 %vm419_vm10, %v371_v40 }
 0x152   : > { %761 = vmatmul.mubr.msk.f32.vlgmr.msra.gmra.mrb[0].mxu0 %vm435_vm3, %v428_v41 }
 0x15a   : > { %v433_v42 = vpop.permute.xlu0 %432 }
 0x225   : > { %v511_v39 = vpop.f32.mrb[0].mxu0 }
 0x226   : > { %v512_v44 = vadd.f32 %v511_v39, %v433_v42  ;;  %v513_v45 = vpop.f32.mrb[1].mxu0 }
 0x227   : > { %v514_v46 = vadd.f32 %v513_v45, %v433_v42 }
 0x228   : > { %v517_v47 = vsel %vm516_vm4, %v512_v44, 0.0  ;;  %v523_v48 = vmul.f32 %v512_v44, %v512_v44 }
 0x229   : > { %v518_v43 = vsel %vm516_vm4, %v514_v46, 0.0  ;;  %v524_v49 = vmul.f32 %v514_v46, %v514_v46 }
 0x22a   : > { %v519_v50 = vadd.f32 %v518_v43, %v517_v47  ;;  %v525_v51 = vsel %vm516_vm4, %v523_v48, 0.0 }
 0x22b   : > { %v526_v52 = vsel %vm516_vm4, %v524_v49, 0.0 }
 0x22c   : > { %520 = vadd.xlane.f32.xlu1 %v519_v50  ;;  %v527_v53 = vadd.f32 %v526_v52, %v525_v51 }
 0x22e   : > { %528 = vadd.xlane.f32.xlu0 %v527_v53 }
 0x23d   : > { %545 = vperm.xlu1 %879, %v542_v54  }
 0x2b9   : > { %v521_v55 = vpop.xlane.xlu1 %520 }
 0x2ba   : > { %v522_v56 = vmul.f32 0.00390625, %v521_v55 }
 0x2bb   : > { %v529_v57 = vpop.xlane.xlu0 %528 }
 0x2bc   : > { %v530_v58 = vmul.f32 0.00390625, %v529_v57  ;;  %v531_v59 = vmul.f32 %v522_v56, %v522_v56  ;;  %v533_v62 = vsub.f32 %v512_v44, %v522_v56  ;;  %v534_v63 = vsub.f32 %v514_v46, %v522_v56 }
 0x2bd   : > { %v546_v6 = vpop.permute.xlu1 %545 }
 0x2be   : > { %v532_v60 = vsub.f32 %v530_v58, %v531_v59 }
 0x2c0   : > { %v535_v61 = vadd.f32 1e-05, %v532_v60 }
 0x2c2   : > { %883 = vrsqrt.f32 %v535_v61 }
 0x2cc   : > { %v884_v0 = vpop.eup %883 }
 0x2cd   : > { %v538_v1 = vmul.f32 %v884_v0, %v534_v63  ;;  %v537_v2 = vmul.f32 %v884_v0, %v533_v62 }
 0x2cf   : > { %v540_v3 = vmax.f32 %v538_v1, 0.0  ;;  %v539_v4 = vmax.f32 %v537_v2, 0.0 }
 0x2d1   : > { %762 = vmatprep.subr.msk.mxu1 %vm516_vm4, %v540_v3 }
 0x2d2   : > { %763 = vmatpush1.msk.msra.mxu1 %vm516_vm4, %v539_v4 }
 0x2d3   : > { %764 = vmatmul.mubr.msk.f32.vlgmr.msra.gmra.mrb[0].mxu1 %vm548_vm5, %v541_v5 }
 0x3a6   : > { %v624_v7 = vpop.f32.mrb[0].mxu1 }
 0x3a7   : > { %v625_v8 = vadd.f32 %v624_v7, %v546_v6  ;;  %v626_v9 = vpop.f32.mrb[1].mxu1 }
 0x3a8   : > { %v627_v10 = vadd.f32 %v626_v9, %v546_v6 }
 0x3a9   : > { %v629_v11 = vsel %vm516_vm4, %v625_v8, 0.0  ;;  %v635_v12 = vmul.f32 %v625_v8, %v625_v8 }
 0x3aa   : > { %v630_v13 = vsel %vm516_vm4, %v627_v10, 0.0  ;;  %v636_v14 = vmul.f32 %v627_v10, %v627_v10 }
 0x3ab   : > { %v631_v15 = vadd.f32 %v630_v13, %v629_v11  ;;  %v637_v16 = vsel %vm516_vm4, %v635_v12, 0.0 }
 0x3ac   : > { %v638_v18 = vsel %vm516_vm4, %v636_v14, 0.0 }
 0x3ad   : > { %632 = vadd.xlane.f32.xlu0 %v631_v15  ;;  %v639_v19 = vadd.f32 %v638_v18, %v637_v16 }
 0x3b1   : > { %640 = vadd.xlane.f32.xlu0 %v639_v19 }
 0x43a   : > { %v633_v20 = vpop.xlane.xlu0 %632 }
 0x43b   : > { %v634_v22 = vmul.f32 0.00390625, %v633_v20 }
 0x43d   : > { %v643_v23 = vmul.f32 %v634_v22, %v634_v22  ;;  %v645_v27 = vsub.f32 %v625_v8, %v634_v22  ;;  %v646_v28 = vsub.f32 %v627_v10, %v634_v22 }
 0x43e   : > { %v641_v17 = vpop.xlane.xlu0 %640 }
 0x43f   : > { %v642_v24 = vmul.f32 0.00390625, %v641_v17 }
 0x441   : > { %v644_v25 = vsub.f32 %v642_v24, %v643_v23 }
 0x443   : > { %v647_v26 = vadd.f32 1e-05, %v644_v25 }
 0x445   : > { %885 = vrsqrt.f32 %v647_v26 }
 0x44f   : > { %v886_v29 = vpop.eup %885 }
 0x450   : > { %v649_v30 = vmul.f32 %v886_v29, %v645_v27  ;;  %v650_v31 = vmul.f32 %v886_v29, %v646_v28 }
 0x452   : > { %v651_v32 = vmax.f32 %v649_v30, 0.0  ;;  %v652_v33 = vmax.f32 %v650_v31, 0.0 }
 0x454   : > { %v655_v34 = vcombine.low %v651_v32, %v652_v33 }
 0x456   : > { %765 = vst.sshfl [vmem:[%s240_s16] sm:$0x33 pattern:$0x76325410] %v655_v34 }
 0x457   : > { %930 = shalt.err (!%p927_p4)
}
 0x458   : > { %s931_s13 = scalar_lea.hbm %s1250_s7, 64  ;;  %s935_s12 = scalar_lea.hbm %s1299_s5, 128 }
 0x459   : > { %p932_p5 = scmp.ne.s32.totalorder %s1250_s7, %s931_s13  ;;  %p936_p0 = scmp.lt.u32.totalorder %s1250_s7, %s1299_s5 }
 0x45a   : > { %p937_p1 = scmp.lt.u32.totalorder %s935_s12, %s931_s13  ;;  %p939_p6 = scmp.lt.u32.totalorder %s931_s13, %s1250_s7 }
 0x45b   : > { %p933_p8 = pnand %p932_p5, %p1316_p11 }
 0x45c   : > { %p938_p3 = por %p937_p1, %p936_p0 }
 0x45d   : > { %p934_p9 = pneg %p933_p8 }
 0x45e   : > { %p940_p12 = por %p939_p6, %p938_p3 }
 0x460   : > { %p941_p13 = pnand %p940_p12, %p934_p9 }
 0x462   : > { %944 = shalt.err (!%p941_p13)
}
 0x463   : > { %783 = dma.vmem_to_hbm [thread:$0]  (%p1316_p11), %s1252_s26, 64, %s1250_s7, %s666_s9  }
 0x464 PF: > { %s692_s15 = sand.u32 1, %s971_s18   ;;  %p1317_p7 = scmp.ne.s32.totalorder %s1304_s6, 0 }
 0x465   : > { %p1318_p10 = scmp.ge.s32.totalorder %s983_s21, 2  ;;  %s693_s16 = scalar_lea.sflag [#allocation5], %s692_s15 }
 0x467   : > { %p790_p2 = pnand %p1318_p10, %p1317_p7 }
 0x469   : > { %966 = dma.done.wait (!%p790_p2), %s693_s16, 64  }
 0x46a   : > { %968 = vsyncadd (!%p790_p2), %s693_s16, 4294967232  ;;  %p18_p4 = scmp.ge.s32.totalorder %s1053_s24, 4   ;;  %s1319_s18 = smov %s975_s19 }
 0x46b   : > { %s1320_s19 = smov %s979_s20  ;;  %s1321_s20 = smov %s1065_s27 }
 0x46c   : > { %s1322_s21 = smov %s1053_s24  ;;  %20 = sbr.rel (!%p18_p4) target bundleno = 5 (0x5), region = 85 }
 0x473   :  { %698 = vsyncpa [#allocation4], 1 }
 0x474   :  { %700 = vsyncpa [#allocation4 + $0x1], 1 }
 0x475   :  { %701 = vsyncpa [#allocation5], 1 }
 0x476   :  { %703 = vsyncpa [#allocation5 + $0x1], 1 }

</bundles_post_ra>
